<compile_context>
chip_gen: v7x
topology: tpu7x:2x2x1
jax: 0.10.0
libtpu: 0.0.40
codegen_flags: <defaults>
</compile_context>

<pallas_src>
import jax
import jax.numpy as jnp
from jax.experimental import pallas as pl
from jax.experimental.pallas import tpu as pltpu


def _round_up(n: int, m: int) -> int:
    return ((n + m - 1) // m) * m


def _mlp_kernel(x_ref, w1_ref, b1_ref, w2t_ref, b2_ref, o_ref):
    # x:(TB, D)  w1:(D, Hp)  b1:(1, Hp)  w2t:(O, Hp)  b2:(O, 1)  o:(O, TB)
    h = jnp.dot(x_ref[...], w1_ref[...], preferred_element_type=jnp.float32)
    h = jnp.maximum(h + b1_ref[...], 0.0)              # bias + ReLU in f32 (VPU)
    # Second layer evaluated directly in the transposed orientation so the
    # store is lane-dense (batch on lanes):  out_T[o, b] = sum_k w2t[o,k]*h[b,k]
    out_t = jax.lax.dot_general(
        w2t_ref[...], h.astype(w2t_ref.dtype),
        (((1,), (1,)), ((), ())), preferred_element_type=jnp.float32)
    o_ref[...] = (out_t + b2_ref[...]).astype(o_ref.dtype)


def objective_or_constraint_forward(x, w1, b1, w2, b2, *,
                                    batch_tile=2048,
                                    compute_dtype=jnp.float32):
    """Equivalent of ObjectiveOrConstraint.forward (prepare_inputs=None).

    x: (batch, dim) float32  ->  (batch, dim_out) float32
    """
    batch, dim = x.shape
    hidden = w1.shape[1]
    dim_out = w2.shape[1]

    b1 = jnp.asarray(b1, jnp.float32).reshape(1, hidden)
    b2c = jnp.asarray(b2, jnp.float32).reshape(dim_out, 1)   # per-output-row bias

    # Zero-pad hidden to a lane-dense multiple of 128.  Exact: relu(0 + 0) = 0
    # contributes nothing through the zero-padded w2 rows.
    hp = _round_up(hidden, 128)
    if hp != hidden:
        w1 = jnp.pad(w1, ((0, 0), (0, hp - hidden)))
        b1 = jnp.pad(b1, ((0, 0), (0, hp - hidden)))
        w2 = jnp.pad(w2, ((0, hp - hidden), (0, 0)))
    w2t = w2.T                                                # (dim_out, hp)

    itemsize = jnp.dtype(compute_dtype).itemsize

    # ---- Batch tiling: lane-dense tiles (multiples of 128), streamed over a
    # 1-D "parallel" grid while the (tiny) weights stay VMEM-resident. --------
    batch_128 = _round_up(batch, 128)
    # VMEM budget for the double-buffered streamed x block (keeps v7x's 64 MiB
    # VMEM / 32 MiB scoped default comfortable even for large `dim`).
    max_tb_vmem = max(128, ((8 << 20) // max(1, 2 * dim * itemsize)) // 128 * 128)
    tb = min(batch_128, _round_up(batch_tile, 128), max_tb_vmem)
    # v7x has 2 TensorCores; make sure the "parallel" grid has >= 2 steps when
    # the batch allows it so both cores get work (no effect on v5e/v6e).
    if batch_128 // tb < 2 and batch_128 >= 256:
        tb = min(tb, _round_up(batch_128 // 2, 128))
    batch_p = _round_up(batch, tb)
    if batch_p != batch:
        x = jnp.pad(x, ((0, batch_p - batch), (0, 0)))

    x = x.astype(compute_dtype)
    w1 = w1.astype(compute_dtype)
    w2t = w2t.astype(compute_dtype)

    grid = (batch_p // tb,)

    cost = pl.CostEstimate(
        flops=2 * batch_p * (dim * hp + hp * dim_out),
        transcendentals=0,
        bytes_accessed=(x.size + w1.size + w2t.size) * itemsize
                       + (b1.size + b2c.size + batch_p * dim_out) * 4)

    stream_bytes = 2 * (tb * dim * itemsize + dim_out * tb * 4)   # x + out, dbl-buffered
    weight_bytes = 2 * ((w1.size + w2t.size) * itemsize + (b1.size + b2c.size) * 4)
    vmem_limit = int(min(max(stream_bytes + weight_bytes + (4 << 20), 32 << 20),
                         100 << 20))

    out_t = pl.pallas_call(
        _mlp_kernel,
        out_shape=jax.ShapeDtypeStruct((dim_out, batch_p), jnp.float32),
        grid=grid,
        in_specs=[
            pl.BlockSpec((tb, dim), lambda i: (i, 0)),       # x: streamed per tile
            pl.BlockSpec((dim, hp), lambda i: (0, 0)),       # weights: VMEM-resident
            pl.BlockSpec((1, hp), lambda i: (0, 0)),
            pl.BlockSpec((dim_out, hp), lambda i: (0, 0)),
            pl.BlockSpec((dim_out, 1), lambda i: (0, 0)),
            # TODO(synk): for very large resident weights on v7x (64 MiB VMEM),
            # single-buffer them via pipeline_mode=pl.Buffered(1).
        ],
        out_specs=pl.BlockSpec((dim_out, tb), lambda i: (0, i)),   # lane-dense store
        compiler_params=pltpu.CompilerParams(
            dimension_semantics=("parallel",),               # megacore / v7x 2 TCs
            vmem_limit_bytes=vmem_limit),
        cost_estimate=cost,
    )(x, w1, b1, w2t, b2c)

    # (dim_out, batch) -> (batch, dim_out).  Free for dim_out == 1 (same
    # contiguous layout), negligible for small stacked heads.
    return out_t[:, :batch].T


def fuse_heads(w1, b1, heads):
    """Concatenate several (w2, b2) heads sharing the same backbone (w1, b1)
    into one wide head, so objective + constraints run in a single pallas_call
    (x is streamed from HBM and the first-layer matmul is computed once)."""
    w2 = jnp.concatenate([jnp.asarray(w, jnp.float32) for w, _ in heads], axis=1)
    b2 = jnp.concatenate([jnp.asarray(b, jnp.float32).reshape(1, -1)
                          for _, b in heads], axis=1)
    return w1, b1, w2, b2


class ObjectiveOrConstraintPallas:
    """Mirror of the PyTorch wrapper (eval-mode, no grad bookkeeping needed)."""

    def __init__(self, params, dim=None, dim_out=1, name=None,
                 dtype=jnp.float32, prepare_inputs=None, is_differentiable=False,
                 batch_tile=2048, compute_dtype=jnp.float32):
        self.params = tuple(params)        # (w1, b1, w2, b2) -- the wrapped "model"
        self.dim = dim
        self.dim_out = dim_out
        self.name = name
        self.dtype = dtype
        self.prepare_inputs = prepare_inputs
        self.is_differentiable = is_differentiable
        self.batch_tile = batch_tile
        self.compute_dtype = compute_dtype   # bf16 recommended on v6e/v7x

    def forward(self, x):
        x = self.prepare_inputs(x) if self.prepare_inputs else x
        x = jnp.asarray(x, self.dtype)
        return objective_or_constraint_forward(
            x, *self.params, batch_tile=self.batch_tile,
            compute_dtype=self.compute_dtype)

    __call__ = forward

    def single_eval(self, x):
        # NOTE: prefer batching the solver's probe points into one forward()
        # call -- batch=1 is pure launch overhead for this kernel.
        out = self.forward(jnp.asarray(x, self.dtype).reshape(1, -1))
        return jax.device_get(out)[0]


if __name__ == "__main__":
    # Small solver-like shapes.  batch deliberately NOT a multiple of 8/128 to
    # exercise the lane-padding + tiling path.
    batch, dim, hidden = 10, 32, 64

    key = jax.random.PRNGKey(0)
    kx, kw1, kb1, kw2, kb2, kw3, kb3, kx2 = jax.random.split(key, 8)

    x = jax.random.normal(kx, (batch, dim), jnp.float32)

    # Deterministic synthetic parameters for the wrapped "model" (MLP).
    w1 = jax.random.normal(kw1, (dim, hidden), jnp.float32) / jnp.sqrt(dim)
    b1 = jax.random.normal(kb1, (1, hidden), jnp.float32) * 0.1

    # Objective head: dim_out = 1 (lane-dense (1, tb) output path).
    w2 = jax.random.normal(kw2, (hidden, 1), jnp.float32) / jnp.sqrt(hidden)
    b2 = jax.random.normal(kb2, (1, 1), jnp.float32) * 0.1
    ref_f = jnp.maximum(x @ w1 + b1, 0.0) @ w2 + b2

    f = ObjectiveOrConstraintPallas((w1, b1, w2, b2), dim=dim, dim_out=1,
                                    name="objective", is_differentiable=True)
    out_f = jax.block_until_ready(f(x))
    assert out_f.shape == (batch, 1), out_f.shape
    assert jnp.allclose(out_f, ref_f, atol=1e-5, rtol=1e-5), "objective mismatch"

    # Constraint head with stacked outputs: dim_out = 4.
    dim_out_g = 4
    w3 = jax.random.normal(kw3, (hidden, dim_out_g), jnp.float32) / jnp.sqrt(hidden)
    b3 = jax.random.normal(kb3, (1, dim_out_g), jnp.float32) * 0.1
    ref_g = jnp.maximum(x @ w1 + b1, 0.0) @ w3 + b3

    g = ObjectiveOrConstraintPallas((w1, b1, w3, b3), dim=dim, dim_out=dim_out_g,
                                    name="constraint")
    out_g = jax.block_until_ready(g(x))
    assert out_g.shape == (batch, dim_out_g), out_g.shape
    assert jnp.allclose(out_g, ref_g, atol=1e-5, rtol=1e-5), "constraint mismatch"

    # Fused objective + constraint heads sharing the backbone: ONE pallas_call.
    fw1, fb1, fw2, fb2 = fuse_heads(w1, b1, [(w2, b2), (w3, b3)])
    fused = ObjectiveOrConstraintPallas((fw1, fb1, fw2, fb2), dim=dim,
                                        dim_out=1 + dim_out_g, name="fused")
    out_fused = jax.block_until_ready(fused(x))
    assert out_fused.shape == (batch, 1 + dim_out_g), out_fused.shape
    assert jnp.allclose(out_fused[:, :1], ref_f, atol=1e-5, rtol=1e-5), "fused obj"
    assert jnp.allclose(out_fused[:, 1:], ref_g, atol=1e-5, rtol=1e-5), "fused con"

    # bf16-streaming mode (recommended on v6e/v7x); f32 accumulation kept, so
    # only input/weight rounding error remains -> looser tolerance.
    f_bf16 = ObjectiveOrConstraintPallas((w1, b1, w2, b2), dim=dim, dim_out=1,
                                         compute_dtype=jnp.bfloat16)
    out_bf16 = jax.block_until_ready(f_bf16(x))
    assert jnp.allclose(out_bf16, ref_f, atol=5e-2, rtol=5e-2), "bf16 mismatch"

    # Multi-tile path (grid >= 2 so both v7x TensorCores would be used).
    xb = jax.random.normal(kx2, (300, dim), jnp.float32)
    ref_big = jnp.maximum(xb @ w1 + b1, 0.0) @ w2 + b2
    out_big = jax.block_until_ready(f(xb))
    assert out_big.shape == (300, 1), out_big.shape
    assert jnp.allclose(out_big, ref_big, atol=1e-5, rtol=1e-5), "multi-tile mismatch"

    # single_eval path (reshape(1,-1) -> forward -> squeeze), like the wrapper.
    se = f.single_eval(x[0])
    assert se.shape == (1,)

    print("KERNEL_OK")
</pallas_src>

<mosaic_0001>
module attributes {stable_mosaic.version = 11 : i64} {
  func.func @_mlp_kernel(%arg0: i32, %arg1: memref<128x32xf32, #tpu.memory_space<vmem>>, %arg2: memref<32x128xf32, #tpu.memory_space<vmem>>, %arg3: memref<1x128xf32, #tpu.memory_space<vmem>>, %arg4: memref<1x128xf32, #tpu.memory_space<vmem>>, %arg5: memref<1x1xf32, #tpu.memory_space<vmem>>, %arg6: memref<1x128xf32, #tpu.memory_space<vmem>>) attributes {dimension_semantics = [#tpu.dimension_semantics<parallel>], iteration_bounds = array<i64: 1>, scalar_prefetch = 0 : i64, scratch_operands = 0 : i64, tpu.core_type = #tpu.core_type<tc>, window_params = [{transform_indices = @transform_0, window_bounds = array<i64: 128, 32>}, {pipeline_mode = #tpu.pipeline_mode<synchronous>, transform_indices = @transform_1, window_bounds = array<i64: 32, 128>}, {pipeline_mode = #tpu.pipeline_mode<synchronous>, transform_indices = @transform_2, window_bounds = array<i64: 1, 128>}, {pipeline_mode = #tpu.pipeline_mode<synchronous>, transform_indices = @transform_3, window_bounds = array<i64: 1, 128>}, {pipeline_mode = #tpu.pipeline_mode<synchronous>, transform_indices = @transform_4, window_bounds = array<i64: 1, 1>}, {transform_indices = @transform_5, window_bounds = array<i64: 1, 128>}]} {
    %c0 = arith.constant 0 : index
    %c0_0 = arith.constant 0 : index
    %0 = vector.load %arg1[%c0, %c0_0] : memref<128x32xf32, #tpu.memory_space<vmem>>, vector<128x32xf32>
    %c0_1 = arith.constant 0 : index
    %c0_2 = arith.constant 0 : index
    %1 = vector.load %arg2[%c0_1, %c0_2] : memref<32x128xf32, #tpu.memory_space<vmem>>, vector<32x128xf32>
    %cst = arith.constant dense<0.000000e+00> : vector<128x128xf32>
    %2 = tpu.matmul %0, %1, %cst {dimension_numbers = #tpu.dot_dimension_numbers<[1], [0], [0], [1], [0, 0, 1, 1], [], []>} : vector<128x32xf32>, vector<32x128xf32>, vector<128x128xf32> -> vector<128x128xf32>
    %c0_3 = arith.constant 0 : index
    %c0_4 = arith.constant 0 : index
    %3 = vector.load %arg3[%c0_3, %c0_4] : memref<1x128xf32, #tpu.memory_space<vmem>>, vector<1x128xf32>
    %4 = vector.broadcast %3 : vector<1x128xf32> to vector<128x128xf32>
    %5 = arith.addf %2, %4 : vector<128x128xf32>
    %cst_5 = arith.constant 0.000000e+00 : f32
    %6 = vector.broadcast %cst_5 : f32 to vector<128x128xf32>
    %7 = arith.maximumf %5, %6 : vector<128x128xf32>
    %c0_6 = arith.constant 0 : index
    %c0_7 = arith.constant 0 : index
    %8 = vector.load %arg4[%c0_6, %c0_7] : memref<1x128xf32, #tpu.memory_space<vmem>>, vector<1x128xf32>
    %cst_8 = arith.constant dense<0.000000e+00> : vector<1x128xf32>
    %9 = tpu.matmul %8, %7, %cst_8 {dimension_numbers = #tpu.dot_dimension_numbers<[1], [1], [0], [0], [0, 0, 1, 0], [], []>} : vector<1x128xf32>, vector<128x128xf32>, vector<1x128xf32> -> vector<1x128xf32>
    %c0_9 = arith.constant 0 : index
    %c0_10 = arith.constant 0 : index
    %10 = vector.load %arg5[%c0_9, %c0_10] : memref<1x1xf32, #tpu.memory_space<vmem>>, vector<1x1xf32>
    %11 = vector.broadcast %10 : vector<1x1xf32> to vector<1x128xf32>
    %12 = arith.addf %9, %11 : vector<1x128xf32>
    %c0_11 = arith.constant 0 : index
    %c0_12 = arith.constant 0 : index
    %13 = vector.load %arg6[%c0_11, %c0_12] : memref<1x128xf32, #tpu.memory_space<vmem>>, vector<1x128xf32>
    tpu.vector_store %arg6[%c0_11, %c0_12], %12 {strides = array<i32>} : memref<1x128xf32, #tpu.memory_space<vmem>>, vector<1x128xf32>,
    return
  }
  func.func @transform_0(%arg0: i32) -> (i32, i32) {
    %c0_i32 = arith.constant 0 : i32
    %c0_i32_0 = arith.constant 0 : i32
    return %arg0, %c0_i32 : i32, i32
  }
  func.func @transform_1(%arg0: i32) -> (i32, i32) {
    %c0_i32 = arith.constant 0 : i32
    %c0_i32_0 = arith.constant 0 : i32
    %c0_i32_1 = arith.constant 0 : i32
    return %c0_i32, %c0_i32_0 : i32, i32
  }
  func.func @transform_2(%arg0: i32) -> (i32, i32) {
    %c0_i32 = arith.constant 0 : i32
    %c0_i32_0 = arith.constant 0 : i32
    %c0_i32_1 = arith.constant 0 : i32
    return %c0_i32, %c0_i32_0 : i32, i32
  }
  func.func @transform_3(%arg0: i32) -> (i32, i32) {
    %c0_i32 = arith.constant 0 : i32
    %c0_i32_0 = arith.constant 0 : i32
    %c0_i32_1 = arith.constant 0 : i32
    return %c0_i32, %c0_i32_0 : i32, i32
  }
  func.func @transform_4(%arg0: i32) -> (i32, i32) {
    %c0_i32 = arith.constant 0 : i32
    %c0_i32_0 = arith.constant 0 : i32
    %c0_i32_1 = arith.constant 0 : i32
    return %c0_i32, %c0_i32_0 : i32, i32
  }
  func.func @transform_5(%arg0: i32) -> (i32, i32) {
    %c0_i32 = arith.constant 0 : i32
    %c0_i32_0 = arith.constant 0 : i32
    return %c0_i32, %arg0 : i32, i32
  }
}

</mosaic_0001>

<bundles_post_ra>
// kernel: tpu_custom_call.1
= control target key start
LH: loop header
LB: loop body
LE: loop exit
PB: predicated region body
PF: predicated region fallthrough
CT: control target
= control target key end

     0   :  { %s679_s0 = inlined_call_operand.vmem [shape: f32[128,32], index: 0, kind: input, shape index: {}]   ;;  %s680_s1 = inlined_call_operand.vmem [shape: f32[32,128], index: 1, kind: input, shape index: {}]   ;;  %s681_s2 = inlined_call_operand.vmem [shape: f32[1,128], index: 2, kind: input, shape index: {}]   ;;  %s682_s3 = inlined_call_operand.vmem [shape: f32[1,128], index: 3, kind: input, shape index: {}]   ;;  %s683_s4 = inlined_call_operand.<no memory space> [shape: f32[1,1], index: 4, kind: input, shape index: {}]   ;;  %s684_s5 = inlined_call_operand.hbm [shape: f32[1,128], index: 5, kind: output, shape index: {}]  }
   0x1   :  { %v10_v0 = vstv %s683_s4 }
   0x2   :  { %11 = vst [vmem:[#allocation2] sm:$0x1] %v10_v0 }
   0x3   :  { %v39_v1 = vld [vmem:[%s680_s1] sm:$0xff]  ;;  %v40_v2 = vld [vmem:[%s680_s1 + $0x8] sm:$0xff]  ;;  %v41_v3 = vld [vmem:[%s680_s1 + $0x10] sm:$0xff]  ;;  %vm50_vm0 = vcmask 261120  }
   0x4   :  { %v477_v4 = vpack.c.bf16 %v40_v2, %v39_v1  ;;  %v42_v5 = vld [vmem:[%s680_s1 + $0x18] sm:$0xff]  ;;  %v23_v6 = vld [vmem:[%s679_s0] sm:$0xff] }
   0x5   :  { %v481_v7 = vpack.c.bf16 %v42_v5, %v41_v3  ;;  %418 = vmatprep.mubr.msk.f32.mxu0 %vm50_vm0, %v23_v6 }
   0x6   :  { %478 = vmatprep.subr.bf16.mxu0 %v477_v4 }
   0x7   :  { %480 = vmatpush3.bf16.msra.mxu0 %v477_v4 }
   0x8   :  { %482 = vmatprep.subr.bf16.mxu0 %v481_v7 }
   0x9   :  { %12 = vsyncpa [#allocation4], 0  ;;  %v24_v8 = vld [vmem:[%s679_s0 + $0x8] sm:$0xff]  ;;  %v25_v9 = vld [vmem:[%s679_s0 + $0x10] sm:$0xff]  ;;  %v539_v23 = vmov 0.0|0.0   ;;  %vm540_vm1 = vmmov 0  }
   0xa   :  { %v26_v10 = vld [vmem:[%s679_s0 + $0x18] sm:$0xff]  ;;  %v27_v11 = vld [vmem:[%s679_s0 + $0x20] sm:$0xff]  ;;  %v28_v12 = vld [vmem:[%s679_s0 + $0x28] sm:$0xff]  ;;  %485 = vmatprep.subr.bf16.mxu1 %v539_v23  ;;  %v541_v24 = vmov 0.0   ;;  %v542_v26 = vmov 0   ;;  %s543_s8 = smov [#allocation3]  }
   0xb   :  { %484 = vmatpush3.bf16.msra.mxu0 %v481_v7  ;;  %v29_v13 = vld [vmem:[%s679_s0 + $0x30] sm:$0xff]  ;;  %v30_v14 = vld [vmem:[%s679_s0 + $0x38] sm:$0xff]  ;;  %v31_v15 = vld [vmem:[%s679_s0 + $0x40] sm:$0xff]  ;;  %474 = vmatprep.mubr.msk.f32.mxu1 %vm540_vm1, %v541_v24  ;;  %s348_s9 = sshll.u32 %s543_s8, 4  ;;  %s349_s9 = int_to_ptr.vmem [resolvable:$true] %s348_s9 }
   0xc   :  { %v32_v16 = vld [vmem:[%s679_s0 + $0x48] sm:$0xff]  ;;  %v33_v17 = vld [vmem:[%s679_s0 + $0x50] sm:$0xff]  ;;  %v34_v18 = vld [vmem:[%s679_s0 + $0x58] sm:$0xff]  ;;  %514 = vset.pattern.permute.xlu0 %v542_v26  ;;  %s515_s10 = scalar_lea.vmem %s349_s9, 16  ;;  %s519_s11 = scalar_lea.vmem %s349_s9, 32 }
   0xd   :  { %v35_v19 = vld [vmem:[%s679_s0 + $0x60] sm:$0xff]  ;;  %v36_v20 = vld [vmem:[%s679_s0 + $0x68] sm:$0xff]  ;;  %v37_v21 = vld [vmem:[%s679_s0 + $0x70] sm:$0xff]  ;;  %p516_p0 = scmp.ne.s32.totalorder %s349_s9, %s515_s10  ;;  %p520_p1 = scmp.lt.s32.totalorder %s349_s9, %s349_s9 }
   0xe   :  { %419 = vmatmul.mubr.msk.f32.vlgmr.msra.gmra.mrb[0].mxu0 %vm50_vm0, %v24_v8  ;;  %v38_v22 = vld [vmem:[%s679_s0 + $0x78] sm:$0xff]  ;;  %v261_v25 = vld [vmem:[#allocation2] sm:$0x1]  ;;  %p521_p2 = scmp.lt.s32.totalorder %s519_s11, %s515_s10 }
   0xf   :  { %421 = vmatprep.mubr.msk.f32.mxu0 %vm50_vm0, %v25_v9  ;;  %264 = vperm.xlu0 %514, %v261_v25   ;;  %v356_v27 = vld [vmem:[%s681_s2] ss:$0 sm:$0xff] }
  0x10   :  { %p522_p3 = por %p521_p2, %p520_p1 }
  0x12   :  { %422 = vmatmul.mubr.msk.f32.gmra.mrb[2].mxu0 %vm50_vm0, %v26_v10  ;;  %p523_p4 = pnand %p522_p3, %p516_p0 }
  0x13   :  { %424 = vmatprep.mubr.msk.f32.mxu0 %vm50_vm0, %v27_v11 }
  0x16   :  { %425 = vmatmul.mubr.msk.f32.gmra.mrb[4].mxu0 %vm50_vm0, %v28_v12 }
  0x17   :  { %427 = vmatprep.mubr.msk.f32.mxu0 %vm50_vm0, %v29_v13 }
  0x1a   :  { %428 = vmatmul.mubr.msk.f32.gmra.mrb[6].mxu0 %vm50_vm0, %v30_v14 }
  0x1b   :  { %430 = vmatprep.mubr.msk.f32.mxu0 %vm50_vm0, %v31_v15 }
  0x1e   :  { %431 = vmatmul.mubr.msk.f32.gmra.mrb[8].mxu0 %vm50_vm0, %v32_v16 }
  0x1f   :  { %433 = vmatprep.mubr.msk.f32.mxu0 %vm50_vm0, %v33_v17 }
  0x22   :  { %434 = vmatmul.mubr.msk.f32.gmra.mrb[10].mxu0 %vm50_vm0, %v34_v18 }
  0x23   :  { %436 = vmatprep.mubr.msk.f32.mxu0 %vm50_vm0, %v35_v19 }
  0x26   :  { %437 = vmatmul.mubr.msk.f32.gmra.mrb[12].mxu0 %vm50_vm0, %v36_v20  ;;  %v260_v20 = vld [vmem:[%s682_s3] sm:$0x1] }
  0x27   :  { %439 = vmatprep.mubr.msk.f32.mxu0 %vm50_vm0, %v37_v21  ;;  %v267_v21 = vlaneseq }
  0x2a   :  { %440 = vmatmul.mubr.msk.f32.gmra.mrb[14].mxu0 %vm50_vm0, %v38_v22  ;;  %v268_v22 = vshrl.u32 %v267_v21, 7 }
  0x2c   :  { %v269_v24 = vsub.s32 0, %v268_v22 }
  0x8e   :  { %v265_v25 = vpop.permute.xlu0 %264 }
  0x8f   :  { %v270_v26 = vrot.slane %v265_v25, %v269_v24 }
  0xe1   :  { %v420_v28 = vpop.f32.mrb[0].mxu0 }
  0xe2   :  { %v171_v29 = vadd.f32 %v420_v28, %v356_v27  ;;  %v165_v30 = vpop.f32.mrb[1].mxu0 }
  0xe3   :  { %v166_v31 = vadd.f32 %v356_v27, %v165_v30 }
  0xe4   :  { %v245_v32 = vmax.f32 %v171_v29, 0.0 }
  0xe5   :  { %v244_v33 = vmax.f32 %v166_v31, 0.0  ;;  %v423_v34 = vpop.f32.mrb[2].mxu0 }
  0xe6   :  { %v181_v35 = vadd.f32 %v423_v34, %v356_v27  ;;  %v175_v36 = vpop.f32.mrb[3].mxu0 }
  0xe7   :  { %v176_v37 = vadd.f32 %v356_v27, %v175_v36  ;;  %v486_v38 = vpack.c.bf16 %v245_v32, %v244_v33 }
  0xe8   :  { %v247_v39 = vmax.f32 %v181_v35, 0.0 }
  0xe9   :  { %v246_v40 = vmax.f32 %v176_v37, 0.0  ;;  %487 = vmatpush3.bf16.xpose.msra.mxu1 %v486_v38  ;;  %v426_v41 = vpop.f32.mrb[4].mxu0 }
  0xea   :  { %v191_v42 = vadd.f32 %v426_v41, %v356_v27  ;;  %488 = vmatprep.subr.bf16.mxu1 %v539_v23  ;;  %v185_v43 = vpop.f32.mrb[5].mxu0 }
  0xeb   :  { %v489_v44 = vpack.c.bf16 %v247_v39, %v246_v40  ;;  %v186_v45 = vadd.f32 %v356_v27, %v185_v43 }
  0xec   :  { %v249_v46 = vmax.f32 %v191_v42, 0.0 }
  0xed   :  { %v248_v47 = vmax.f32 %v186_v45, 0.0  ;;  %v429_v48 = vpop.f32.mrb[6].mxu0 }
  0xee   :  { %v201_v49 = vadd.f32 %v429_v48, %v356_v27  ;;  %v195_v50 = vpop.f32.mrb[7].mxu0 }
  0xef   :  { %v492_v51 = vpack.c.bf16 %v249_v46, %v248_v47  ;;  %v196_v52 = vadd.f32 %v356_v27, %v195_v50 }
  0xf0   :  { %v251_v53 = vmax.f32 %v201_v49, 0.0 }
  0xf1   :  { %490 = vmatpush3.bf16.xpose.msra.mxu1 %v489_v44  ;;  %v250_v54 = vmax.f32 %v196_v52, 0.0  ;;  %v432_v55 = vpop.f32.mrb[8].mxu0 }
  0xf2   :  { %491 = vmatprep.subr.bf16.mxu1 %v539_v23  ;;  %v211_v56 = vadd.f32 %v432_v55, %v356_v27  ;;  %v205_v57 = vpop.f32.mrb[9].mxu0 }
  0xf3   :  { %v495_v58 = vpack.c.bf16 %v251_v53, %v250_v54  ;;  %v206_v59 = vadd.f32 %v356_v27, %v205_v57 }
  0xf4   :  { %v253_v60 = vmax.f32 %v211_v56, 0.0 }
  0xf5   :  { %v252_v61 = vmax.f32 %v206_v59, 0.0  ;;  %v435_v62 = vpop.f32.mrb[10].mxu0 }
  0xf6   :  { %v221_v63 = vadd.f32 %v435_v62, %v356_v27  ;;  %v215_v0 = vpop.f32.mrb[11].mxu0 }
  0xf7   :  { %v498_v1 = vpack.c.bf16 %v253_v60, %v252_v61  ;;  %v216_v2 = vadd.f32 %v356_v27, %v215_v0 }
  0xf8   :  { %v255_v3 = vmax.f32 %v221_v63, 0.0 }
  0xf9   :  { %493 = vmatpush3.bf16.xpose.msra.mxu1 %v492_v51  ;;  %v254_v4 = vmax.f32 %v216_v2, 0.0  ;;  %v438_v5 = vpop.f32.mrb[12].mxu0 }
  0xfa   :  { %494 = vmatprep.subr.bf16.mxu1 %v539_v23  ;;  %v231_v6 = vadd.f32 %v438_v5, %v356_v27  ;;  %v225_v7 = vpop.f32.mrb[13].mxu0 }
  0xfb   :  { %v501_v8 = vpack.c.bf16 %v255_v3, %v254_v4  ;;  %v226_v9 = vadd.f32 %v356_v27, %v225_v7 }
  0xfc   :  { %v257_v10 = vmax.f32 %v231_v6, 0.0 }
  0xfd   :  { %v256_v11 = vmax.f32 %v226_v9, 0.0  ;;  %v441_v12 = vpop.f32.mrb[14].mxu0 }
  0xfe   :  { %v241_v13 = vadd.f32 %v441_v12, %v356_v27  ;;  %v235_v14 = vpop.f32.mrb[15].mxu0 }
  0xff   :  { %v504_v15 = vpack.c.bf16 %v257_v10, %v256_v11  ;;  %v236_v16 = vadd.f32 %v356_v27, %v235_v14 }
 0x100   :  { %v259_v17 = vmax.f32 %v241_v13, 0.0 }
 0x101   :  { %496 = vmatpush3.bf16.xpose.msra.mxu1 %v495_v58  ;;  %v258_v18 = vmax.f32 %v236_v16, 0.0 }
 0x102   :  { %497 = vmatprep.subr.bf16.mxu1 %v539_v23 }
 0x103   :  { %v507_v19 = vpack.c.bf16 %v259_v17, %v258_v18 }
 0x109   :  { %499 = vmatpush3.bf16.xpose.msra.mxu1 %v498_v1 }
 0x10a   :  { %500 = vmatprep.subr.bf16.mxu1 %v539_v23 }
 0x111   :  { %502 = vmatpush3.bf16.xpose.msra.mxu1 %v501_v8 }
 0x112   :  { %503 = vmatprep.subr.bf16.mxu1 %v539_v23 }
 0x119   :  { %505 = vmatpush3.bf16.xpose.msra.mxu1 %v504_v15 }
 0x11a   :  { %506 = vmatprep.subr.bf16.mxu1 %v539_v23 }
 0x121   :  { %508 = vmatpush3.bf16.xpose.msra.mxu1 %v507_v19 }
 0x128   :  { %475 = vmatmul.mubr.f32.vlgmr.msra.gmra.mrb[0].mxu1 %v260_v20 }
 0x1fb   :  { %v337_v27 = vpop.f32.mrb[0].mxu1 }
 0x1fc   :  { %v338_v28 = vadd.f32 %v337_v27, %v270_v26  ;;  %v476_v29 = vpop.f32.mrb[1].mxu1 }
 0x1fe   :  { %341 = vst [vmem:[#allocation3] sm:$0x1] %v338_v28 }
 0x1ff   :  { %526 = shalt.err (!%p523_p4)
}
 0x200   :  { %s527_s13 = scalar_lea.hbm %s684_s5, 16 }
 0x201   :  { %p528_p5 = scmp.ne.s32.totalorder %s684_s5, %s527_s13  ;;  %p531_p6 = scmp.lt.u32.totalorder %s527_s13, %s684_s5 }
 0x203   :  { %p533_p7 = pnand %p531_p6, %p528_p5 }
 0x205   :  { %536 = shalt.err (!%p533_p7)
}
 0x206   :  { %351 = dma.vmem_to_hbm [thread:$0]  %s349_s9, 16, %s684_s5, [#allocation4]  }
 0x207   :  { %537 = dma.done.wait [#allocation4], 16  }
 0x208   :  { %538 = vsyncadd [#allocation4], 4294967280 }
 0x209   :  { %355 = vsyncpa [#allocation4], 1 }

</bundles_post_ra>
